<compile_context>
chip_gen: v7x
topology: tpu7x:2x2x1
jax: 0.10.0
libtpu: 0.0.40
codegen_flags: <defaults>
</compile_context>

<pallas_src>
import functools

import jax
import jax.numpy as jnp
from jax.experimental import pallas as pl
from jax.experimental.pallas import tpu as pltpu

W_TASK = 1.0
W_SYNC = 1000.0
W_CRIT = 500.0
W_RATE = 2000.0

# Max lanes per grid step (multiple of 128).  5 inputs x 2 bufs x 16384 x 4 B
# = 640 KiB of pipelined input buffers + 256 KiB scratch: comfortably inside
# v5e's 16 MiB scoped VMEM and v6e/v7x limits, while streaming at the HBM
# roofline for large B.
_MAX_BLOCK_LANES = 16384


def _make_loss_kernel(batch, tb, t_sync, t_rate, t_crit):
    """Kernel factory; batch, tile size and scalar targets are baked-in constants."""
    inv_b = 1.0 / float(batch)

    def kernel(out_row, tgt_row, sync_row, rate_row, crit_row, res_ref, acc_ref):
        k = pl.program_id(0)

        @pl.when(k == 0)
        def _init():
            acc_ref[...] = jnp.zeros_like(acc_ref)

        # Lane-validity mask for the (possibly partial) last block.
        lane = jax.lax.broadcasted_iota(jnp.int32, (1, tb), 1)
        valid = (k * tb + lane) < batch
        zero = jnp.zeros((1, tb), jnp.float32)

        o = out_row[...].astype(jnp.float32)
        t = tgt_row[...].astype(jnp.float32)
        s = sync_row[...].astype(jnp.float32)
        r = rate_row[...].astype(jnp.float32)
        c = crit_row[...].astype(jnp.float32)

        d_task = jnp.where(valid, o - t, zero)
        d_sync = jnp.where(valid, s - jnp.float32(t_sync), zero)
        d_rate = jnp.where(valid, r - jnp.float32(t_rate), zero)
        d_crit = jnp.where(valid, c - jnp.float32(t_crit), zero)

        # Lane-wise partial sums of squares; cross-lane reduce only at the end.
        acc_ref[0:1, :] += d_task * d_task
        acc_ref[1:2, :] += d_sync * d_sync
        acc_ref[2:3, :] += d_rate * d_rate
        acc_ref[3:4, :] += d_crit * d_crit

        @pl.when(k == pl.num_programs(0) - 1)
        def _finalize():
            sums = jnp.sum(acc_ref[...], axis=-1, keepdims=True)        # (4, 1)
            means = sums * jnp.float32(inv_b)                           # task/sync/rate/crit
            task = means[0:1, 0:1]
            sync = means[1:2, 0:1]
            rate = means[2:3, 0:1]
            crit = means[3:4, 0:1]
            total = (jnp.float32(W_TASK) * task + jnp.float32(W_SYNC) * sync
                     + jnp.float32(W_CRIT) * crit + jnp.float32(W_RATE) * rate)

            # Pack the 5 scalars into one lane-dense (1,128) row: one unmasked store.
            lane128 = jax.lax.broadcasted_iota(jnp.int32, (1, 128), 1)
            out = jnp.where(lane128 == 0, task, jnp.float32(0.0))
            out = jnp.where(lane128 == 1, sync, out)
            out = jnp.where(lane128 == 2, rate, out)
            out = jnp.where(lane128 == 3, crit, out)
            out = jnp.where(lane128 == 4, total, out)
            res_ref[...] = out

    return kernel


@functools.partial(
    jax.jit,
    static_argnames=("target_firing_rate", "target_synchrony", "target_branching"))
def custom_loss_all(outputs, targets, criticality, firing_rate,
                    synchrony_fano_factor,
                    target_firing_rate=0.02,
                    target_synchrony=1.4,
                    target_branching=1.0):
    """Returns (task_loss, aux_dict) mirroring CustomLoss_all.forward."""
    B = targets.shape[0]

    # Metadata-only reshapes (no copy): (B,) / (B,1)  ->  (1, B).
    def row(v):
        return jnp.reshape(v, (1, B))

    tb = B if B <= _MAX_BLOCK_LANES else _MAX_BLOCK_LANES
    num_blocks = pl.cdiv(B, tb)

    kernel = _make_loss_kernel(B, tb, target_synchrony, target_firing_rate,
                               target_branching)

    res = pl.pallas_call(
        kernel,
        out_shape=jax.ShapeDtypeStruct((1, 128), jnp.float32),
        grid=(num_blocks,),
        in_specs=[pl.BlockSpec((1, tb), lambda k: (0, k)) for _ in range(5)],
        out_specs=pl.BlockSpec((1, 128), lambda k: (0, 0)),
        scratch_shapes=[pltpu.VMEM((4, tb), jnp.float32)],
        compiler_params=pltpu.CompilerParams(
            dimension_semantics=("arbitrary",)),
        cost_estimate=pl.CostEstimate(
            flops=8 * B, transcendentals=0, bytes_accessed=20 * B + 512),
    )(row(outputs), row(targets), row(synchrony_fano_factor),
      row(firing_rate), row(criticality))

    task_loss = res[0, 0]
    aux = {
        "task_loss": task_loss,
        "synchrony_loss": res[0, 1],
        "rate_loss": res[0, 2],
        "criticality_loss": res[0, 3],
        "total_loss": res[0, 4],
    }
    # The PyTorch module returns task_loss (total_loss computed but unused).
    return task_loss, aux


def _reference(outputs, targets, criticality, firing_rate, sync_ff,
               target_firing_rate=0.02, target_synchrony=1.4,
               target_branching=1.0):
    B = targets.shape[0]
    mse = lambda a, b: jnp.mean((a - b) ** 2)
    task = mse(jnp.squeeze(outputs), targets)
    sync = mse(sync_ff, jnp.full((B,), target_synchrony, jnp.float32))
    rate = mse(firing_rate, jnp.full((B,), target_firing_rate, jnp.float32))
    crit = mse(criticality, jnp.full((B,), target_branching, jnp.float32))
    total = 1.0 * task + 1000.0 * sync + 500.0 * crit + 2000.0 * rate
    return task, sync, rate, crit, total


if __name__ == "__main__":
    B = 25  # module default batch_size
    key = jax.random.PRNGKey(0)
    k1, k2, k3, k4, k5 = jax.random.split(key, 5)

    outputs = jax.random.normal(k1, (B, 1), dtype=jnp.float32)
    targets = jax.random.normal(k2, (B,), dtype=jnp.float32)
    criticality = 1.0 + 0.1 * jax.random.normal(k3, (B,), dtype=jnp.float32)
    firing_rate = 0.02 + 0.005 * jax.random.normal(k4, (B,), dtype=jnp.float32)
    synchrony_ff = 1.4 + 0.2 * jax.random.normal(k5, (B,), dtype=jnp.float32)

    task_loss, aux = custom_loss_all(outputs, targets, criticality,
                                     firing_rate, synchrony_ff)
    jax.block_until_ready(task_loss)
    jax.block_until_ready(aux["total_loss"])

    # sanity check against a pure-JAX reference
    ref = _reference(outputs, targets, criticality, firing_rate, synchrony_ff)
    got = (task_loss, aux["synchrony_loss"], aux["rate_loss"],
           aux["criticality_loss"], aux["total_loss"])
    for g, r in zip(got, ref):
        assert jnp.allclose(g, r, rtol=1e-5, atol=1e-5), (g, r)

    print("KERNEL_OK")
</pallas_src>

<mosaic_0001>
module attributes {stable_mosaic.version = 11 : i64} {
  func.func @kernel(%arg0: i32, %arg1: memref<1x25xf32, #tpu.memory_space<vmem>>, %arg2: memref<1x25xf32, #tpu.memory_space<vmem>>, %arg3: memref<1x25xf32, #tpu.memory_space<vmem>>, %arg4: memref<1x25xf32, #tpu.memory_space<vmem>>, %arg5: memref<1x25xf32, #tpu.memory_space<vmem>>, %arg6: memref<1x128xf32, #tpu.memory_space<vmem>>, %arg7: memref<4x25xf32, #tpu.memory_space<vmem>>) attributes {dimension_semantics = [#tpu.dimension_semantics<arbitrary>], iteration_bounds = array<i64: 1>, scalar_prefetch = 0 : i64, scratch_operands = 1 : i64, tpu.core_type = #tpu.core_type<tc>, window_params = [{transform_indices = @transform_0, window_bounds = array<i64: 1, 25>}, {transform_indices = @transform_1, window_bounds = array<i64: 1, 25>}, {transform_indices = @transform_2, window_bounds = array<i64: 1, 25>}, {transform_indices = @transform_3, window_bounds = array<i64: 1, 25>}, {transform_indices = @transform_4, window_bounds = array<i64: 1, 25>}, {pipeline_mode = #tpu.pipeline_mode<synchronous>, transform_indices = @transform_5, window_bounds = array<i64: 1, 128>}]} {
    %c0_i32 = arith.constant 0 : i32
    %0 = arith.cmpi eq, %arg0, %c0_i32 : i32
    %1 = arith.extui %0 : i1 to i32
    %c0_i32_0 = arith.constant 0 : i32
    %2 = arith.cmpi ne, %1, %c0_i32_0 : i32
    scf.if %2 {
      %cst_29 = arith.constant 0.000000e+00 : f32
      %45 = vector.broadcast %cst_29 : f32 to vector<4x25xf32>
      %c0_30 = arith.constant 0 : index
      %c0_31 = arith.constant 0 : index
      %46 = vector.load %arg7[%c0_30, %c0_31] : memref<4x25xf32, #tpu.memory_space<vmem>>, vector<4x25xf32>
      tpu.vector_store %arg7[%c0_30, %c0_31], %45 {strides = array<i32>} : memref<4x25xf32, #tpu.memory_space<vmem>>, vector<4x25xf32>,
    } else {
    }
    %3 = tpu.iota {dimensions = array<i32: 1>} : vector<1x25xi32>
    %c25_i32 = arith.constant 25 : i32
    %4 = arith.muli %arg0, %c25_i32 : i32
    %5 = vector.broadcast %4 : i32 to vector<1x25xi32>
    %6 = arith.addi %5, %3 : vector<1x25xi32>
    %c25_i32_1 = arith.constant 25 : i32
    %7 = vector.broadcast %c25_i32_1 : i32 to vector<1x25xi32>
    %8 = arith.cmpi slt, %6, %7 : vector<1x25xi32>
    %cst = arith.constant 0.000000e+00 : f32
    %9 = vector.broadcast %cst : f32 to vector<1x25xf32>
    %c0 = arith.constant 0 : index
    %c0_2 = arith.constant 0 : index
    %10 = vector.load %arg1[%c0, %c0_2] : memref<1x25xf32, #tpu.memory_space<vmem>>, vector<1x25xf32>
    %c0_3 = arith.constant 0 : index
    %c0_4 = arith.constant 0 : index
    %11 = vector.load %arg2[%c0_3, %c0_4] : memref<1x25xf32, #tpu.memory_space<vmem>>, vector<1x25xf32>
    %c0_5 = arith.constant 0 : index
    %c0_6 = arith.constant 0 : index
    %12 = vector.load %arg3[%c0_5, %c0_6] : memref<1x25xf32, #tpu.memory_space<vmem>>, vector<1x25xf32>
    %c0_7 = arith.constant 0 : index
    %c0_8 = arith.constant 0 : index
    %13 = vector.load %arg4[%c0_7, %c0_8] : memref<1x25xf32, #tpu.memory_space<vmem>>, vector<1x25xf32>
    %c0_9 = arith.constant 0 : index
    %c0_10 = arith.constant 0 : index
    %14 = vector.load %arg5[%c0_9, %c0_10] : memref<1x25xf32, #tpu.memory_space<vmem>>, vector<1x25xf32>
    %15 = arith.subf %10, %11 : vector<1x25xf32>
    %16 = arith.select %8, %15, %9 : vector<1x25xi1>, vector<1x25xf32>
    %cst_11 = arith.constant 1.400000e+00 : f32
    %17 = vector.broadcast %cst_11 : f32 to vector<1x25xf32>
    %18 = arith.subf %12, %17 : vector<1x25xf32>
    %19 = arith.select %8, %18, %9 : vector<1x25xi1>, vector<1x25xf32>
    %cst_12 = arith.constant 2.000000e-02 : f32
    %20 = vector.broadcast %cst_12 : f32 to vector<1x25xf32>
    %21 = arith.subf %13, %20 : vector<1x25xf32>
    %22 = arith.select %8, %21, %9 : vector<1x25xi1>, vector<1x25xf32>
    %cst_13 = arith.constant 1.000000e+00 : f32
    %23 = vector.broadcast %cst_13 : f32 to vector<1x25xf32>
    %24 = arith.subf %14, %23 : vector<1x25xf32>
    %25 = arith.select %8, %24, %9 : vector<1x25xi1>, vector<1x25xf32>
    %c0_14 = arith.constant 0 : index
    %c0_15 = arith.constant 0 : index
    %26 = vector.load %arg7[%c0_14, %c0_15] : memref<4x25xf32, #tpu.memory_space<vmem>>, vector<1x25xf32>
    %27 = arith.mulf %16, %16 : vector<1x25xf32>
    %28 = arith.addf %26, %27 : vector<1x25xf32>
    %c0_16 = arith.constant 0 : index
    %c0_17 = arith.constant 0 : index
    %29 = vector.load %arg7[%c0_16, %c0_17] : memref<4x25xf32, #tpu.memory_space<vmem>>, vector<1x25xf32>
    tpu.vector_store %arg7[%c0_16, %c0_17], %28 {strides = array<i32>} : memref<4x25xf32, #tpu.memory_space<vmem>>, vector<1x25xf32>,
    %c1 = arith.constant 1 : index
    %c0_18 = arith.constant 0 : index
    %30 = vector.load %arg7[%c1, %c0_18] : memref<4x25xf32, #tpu.memory_space<vmem>>, vector<1x25xf32>
    %31 = arith.mulf %19, %19 : vector<1x25xf32>
    %32 = arith.addf %30, %31 : vector<1x25xf32>
    %c1_19 = arith.constant 1 : index
    %c0_20 = arith.constant 0 : index
    %33 = vector.load %arg7[%c1_19, %c0_20] : memref<4x25xf32, #tpu.memory_space<vmem>>, vector<1x25xf32>
    tpu.vector_store %arg7[%c1_19, %c0_20], %32 {strides = array<i32>} : memref<4x25xf32, #tpu.memory_space<vmem>>, vector<1x25xf32>,
    %c2 = arith.constant 2 : index
    %c0_21 = arith.constant 0 : index
    %34 = vector.load %arg7[%c2, %c0_21] : memref<4x25xf32, #tpu.memory_space<vmem>>, vector<1x25xf32>
    %35 = arith.mulf %22, %22 : vector<1x25xf32>
    %36 = arith.addf %34, %35 : vector<1x25xf32>
    %c2_22 = arith.constant 2 : index
    %c0_23 = arith.constant 0 : index
    %37 = vector.load %arg7[%c2_22, %c0_23] : memref<4x25xf32, #tpu.memory_space<vmem>>, vector<1x25xf32>
    tpu.vector_store %arg7[%c2_22, %c0_23], %36 {strides = array<i32>} : memref<4x25xf32, #tpu.memory_space<vmem>>, vector<1x25xf32>,
    %c3 = arith.constant 3 : index
    %c0_24 = arith.constant 0 : index
    %38 = vector.load %arg7[%c3, %c0_24] : memref<4x25xf32, #tpu.memory_space<vmem>>, vector<1x25xf32>
    %39 = arith.mulf %25, %25 : vector<1x25xf32>
    %40 = arith.addf %38, %39 : vector<1x25xf32>
    %c3_25 = arith.constant 3 : index
    %c0_26 = arith.constant 0 : index
    %41 = vector.load %arg7[%c3_25, %c0_26] : memref<4x25xf32, #tpu.memory_space<vmem>>, vector<1x25xf32>
    tpu.vector_store %arg7[%c3_25, %c0_26], %40 {strides = array<i32>} : memref<4x25xf32, #tpu.memory_space<vmem>>, vector<1x25xf32>,
    %c0_i32_27 = arith.constant 0 : i32
    %42 = arith.cmpi eq, %arg0, %c0_i32_27 : i32
    %43 = arith.extui %42 : i1 to i32
    %c0_i32_28 = arith.constant 0 : i32
    %44 = arith.cmpi ne, %43, %c0_i32_28 : i32
    scf.if %44 {
      %c0_29 = arith.constant 0 : index
      %c0_30 = arith.constant 0 : index
      %45 = vector.load %arg7[%c0_29, %c0_30] : memref<4x25xf32, #tpu.memory_space<vmem>>, vector<4x25xf32>
      %cst_31 = arith.constant dense<0.000000e+00> : vector<4xf32>
      %46 = vector.multi_reduction <add>, %45, %cst_31 [1] : vector<4x25xf32> to vector<4xf32>
      %47 = vector.shape_cast %46 : vector<4xf32> to vector<4x1xf32>
      %cst_32 = arith.constant 4.000000e-02 : f32
      %48 = vector.broadcast %cst_32 : f32 to vector<4x1xf32>
      %49 = arith.mulf %47, %48 : vector<4x1xf32>
      %50 = vector.extract_strided_slice %49 {offsets = [0, 0], sizes = [1, 1], strides = [1, 1]} : vector<4x1xf32> to vector<1x1xf32>
      %51 = vector.extract_strided_slice %49 {offsets = [1, 0], sizes = [1, 1], strides = [1, 1]} : vector<4x1xf32> to vector<1x1xf32>
      %52 = vector.extract_strided_slice %49 {offsets = [2, 0], sizes = [1, 1], strides = [1, 1]} : vector<4x1xf32> to vector<1x1xf32>
      %53 = vector.extract_strided_slice %49 {offsets = [3, 0], sizes = [1, 1], strides = [1, 1]} : vector<4x1xf32> to vector<1x1xf32>
      %cst_33 = arith.constant 1.000000e+00 : f32
      %54 = vector.broadcast %cst_33 : f32 to vector<1x1xf32>
      %55 = arith.mulf %54, %50 : vector<1x1xf32>
      %cst_34 = arith.constant 1.000000e+03 : f32
      %56 = vector.broadcast %cst_34 : f32 to vector<1x1xf32>
      %57 = arith.mulf %56, %51 : vector<1x1xf32>
      %58 = arith.addf %55, %57 : vector<1x1xf32>
      %cst_35 = arith.constant 5.000000e+02 : f32
      %59 = vector.broadcast %cst_35 : f32 to vector<1x1xf32>
      %60 = arith.mulf %59, %53 : vector<1x1xf32>
      %61 = arith.addf %58, %60 : vector<1x1xf32>
      %cst_36 = arith.constant 2.000000e+03 : f32
      %62 = vector.broadcast %cst_36 : f32 to vector<1x1xf32>
      %63 = arith.mulf %62, %52 : vector<1x1xf32>
      %64 = arith.addf %61, %63 : vector<1x1xf32>
      %65 = tpu.iota {dimensions = array<i32: 1>} : vector<1x128xi32>
      %c0_i32_37 = arith.constant 0 : i32
      %66 = vector.broadcast %c0_i32_37 : i32 to vector<1x128xi32>
      %67 = arith.cmpi eq, %65, %66 : vector<1x128xi32>
      %cst_38 = arith.constant 0.000000e+00 : f32
      %68 = vector.shape_cast %50 : vector<1x1xf32> to vector<1x1xf32>
      %69 = vector.broadcast %68 : vector<1x1xf32> to vector<1x128xf32>
      %70 = vector.broadcast %cst_38 : f32 to vector<1x128xf32>
      %71 = arith.select %67, %69, %70 : vector<1x128xi1>, vector<1x128xf32>
      %c1_i32 = arith.constant 1 : i32
      %72 = vector.broadcast %c1_i32 : i32 to vector<1x128xi32>
      %73 = arith.cmpi eq, %65, %72 : vector<1x128xi32>
      %74 = vector.shape_cast %51 : vector<1x1xf32> to vector<1x1xf32>
      %75 = vector.broadcast %74 : vector<1x1xf32> to vector<1x128xf32>
      %76 = arith.select %73, %75, %71 : vector<1x128xi1>, vector<1x128xf32>
      %c2_i32 = arith.constant 2 : i32
      %77 = vector.broadcast %c2_i32 : i32 to vector<1x128xi32>
      %78 = arith.cmpi eq, %65, %77 : vector<1x128xi32>
      %79 = vector.shape_cast %52 : vector<1x1xf32> to vector<1x1xf32>
      %80 = vector.broadcast %79 : vector<1x1xf32> to vector<1x128xf32>
      %81 = arith.select %78, %80, %76 : vector<1x128xi1>, vector<1x128xf32>
      %c3_i32 = arith.constant 3 : i32
      %82 = vector.broadcast %c3_i32 : i32 to vector<1x128xi32>
      %83 = arith.cmpi eq, %65, %82 : vector<1x128xi32>
      %84 = vector.shape_cast %53 : vector<1x1xf32> to vector<1x1xf32>
      %85 = vector.broadcast %84 : vector<1x1xf32> to vector<1x128xf32>
      %86 = arith.select %83, %85, %81 : vector<1x128xi1>, vector<1x128xf32>
      %c4_i32 = arith.constant 4 : i32
      %87 = vector.broadcast %c4_i32 : i32 to vector<1x128xi32>
      %88 = arith.cmpi eq, %65, %87 : vector<1x128xi32>
      %89 = vector.shape_cast %64 : vector<1x1xf32> to vector<1x1xf32>
      %90 = vector.broadcast %89 : vector<1x1xf32> to vector<1x128xf32>
      %91 = arith.select %88, %90, %86 : vector<1x128xi1>, vector<1x128xf32>
      %c0_39 = arith.constant 0 : index
      %c0_40 = arith.constant 0 : index
      %92 = vector.load %arg6[%c0_39, %c0_40] : memref<1x128xf32, #tpu.memory_space<vmem>>, vector<1x128xf32>
      tpu.vector_store %arg6[%c0_39, %c0_40], %91 {strides = array<i32>} : memref<1x128xf32, #tpu.memory_space<vmem>>, vector<1x128xf32>,
    } else {
    }
    return
  }
  func.func @transform_0(%arg0: i32) -> (i32, i32) {
    %c0_i32 = arith.constant 0 : i32
    %c0_i32_0 = arith.constant 0 : i32
    return %c0_i32, %arg0 : i32, i32
  }
  func.func @transform_1(%arg0: i32) -> (i32, i32) {
    %c0_i32 = arith.constant 0 : i32
    %c0_i32_0 = arith.constant 0 : i32
    return %c0_i32, %arg0 : i32, i32
  }
  func.func @transform_2(%arg0: i32) -> (i32, i32) {
    %c0_i32 = arith.constant 0 : i32
    %c0_i32_0 = arith.constant 0 : i32
    return %c0_i32, %arg0 : i32, i32
  }
  func.func @transform_3(%arg0: i32) -> (i32, i32) {
    %c0_i32 = arith.constant 0 : i32
    %c0_i32_0 = arith.constant 0 : i32
    return %c0_i32, %arg0 : i32, i32
  }
  func.func @transform_4(%arg0: i32) -> (i32, i32) {
    %c0_i32 = arith.constant 0 : i32
    %c0_i32_0 = arith.constant 0 : i32
    return %c0_i32, %arg0 : i32, i32
  }
  func.func @transform_5(%arg0: i32) -> (i32, i32) {
    %c0_i32 = arith.constant 0 : i32
    %c0_i32_0 = arith.constant 0 : i32
    %c0_i32_1 = arith.constant 0 : i32
    return %c0_i32, %c0_i32_0 : i32, i32
  }
}

</mosaic_0001>

<bundles_post_ra>
// kernel: custom_loss_all.1
= control target key start
LH: loop header
LB: loop body
LE: loop exit
PB: predicated region body
PF: predicated region fallthrough
CT: control target
= control target key end

     0   :  { %vm24_vm0 = vcmask 199680   ;;  %v26_v0 = vlaneseq  ;;  %v124_v1 = vmov 0.0   ;;  %vm48_vm2 = vcmask 196608   ;;  %s184_s0 = inlined_call_operand.vmem [shape: f32[1,25], index: 0, kind: input, shape index: {}]   ;;  %s185_s1 = inlined_call_operand.vmem [shape: f32[1,25], index: 1, kind: input, shape index: {}]   ;;  %s186_s2 = inlined_call_operand.vmem [shape: f32[1,25], index: 2, kind: input, shape index: {}]   ;;  %s187_s3 = inlined_call_operand.vmem [shape: f32[1,25], index: 3, kind: input, shape index: {}]   ;;  %s188_s4 = inlined_call_operand.vmem [shape: f32[1,25], index: 4, kind: input, shape index: {}]   ;;  %s189_s5 = inlined_call_operand.vmem [shape: f32[1,128], index: 5, kind: output, shape index: {}]  }
   0x1   :  { %25 = vst.msk [vmem:[#allocation2] sm:$0xf] %vm24_vm0, %v124_v1  ;;  %v32_v2 = vld [vmem:[%s184_s0] sm:$0x1]  ;;  %v125_v30 = vmov 0  }
   0x2   :  { %v33_v3 = vld [vmem:[%s185_s1] sm:$0x1]  ;;  %v166_v5 = vand.u32 127, %v26_v0  ;;  %123 = vset.pattern.permute.xlu0 %v125_v30 }
   0x3   :  { %v34_v4 = vld [vmem:[%s186_s2] sm:$0x1]  ;;  %v37_v8 = vsub.f32 %v32_v2, %v33_v3 }
   0x4   :  { %v35_v6 = vld [vmem:[%s187_s3] sm:$0x1]  ;;  %v118_v9 = vadd.f32 -1.4, %v34_v4  ;;  %vm31_vm1 = vcmp.lt.s32.totalorder %v166_v5, 25  ;;  %vm86_vm3 = vcmp.eq.s32.totalorder %v166_v5, 0 }
   0x5   :  { %v36_v7 = vld [vmem:[%s188_s4] sm:$0x1]  ;;  %v119_v10 = vadd.f32 -0.02, %v35_v6  ;;  %v38_v12 = vsel %vm31_vm1, %v37_v8, 0.0  ;;  %vm88_vm4 = vcmp.eq.s32.totalorder %v166_v5, 1 }
   0x6   :  { %v120_v11 = vadd.f32 -1.0, %v36_v7  ;;  %v40_v13 = vsel %vm31_vm1, %v118_v9, 0.0  ;;  %v46_v16 = vmul.f32 %v38_v12, %v38_v12  ;;  %vm93_vm5 = vcmp.eq.s32.totalorder %v166_v5, 2 }
   0x7   :  { %v42_v14 = vsel %vm31_vm1, %v119_v10, 0.0  ;;  %v51_v17 = vmul.f32 %v40_v13, %v40_v13  ;;  %vm98_vm6 = vcmp.eq.s32.totalorder %v166_v5, 3  ;;  %vm103_vm7 = vcmp.eq.s32.totalorder %v166_v5, 4 }
   0x8   :  { %v44_v15 = vsel %vm31_vm1, %v120_v11, 0.0  ;;  %v55_v18 = vmul.f32 %v42_v14, %v42_v14  ;;  %v45_v20 = vld [vmem:[#allocation2] sm:$0x1]  ;;  %v50_v21 = vld [vmem:[#allocation2 + $0x1] sm:$0x1] }
   0x9   :  { %v59_v19 = vmul.f32 %v44_v15, %v44_v15  ;;  %v54_v22 = vld [vmem:[#allocation2 + $0x2] sm:$0x1]  ;;  %v47_v23 = vadd.f32 %v46_v16, %v45_v20  ;;  %v52_v24 = vadd.f32 %v51_v17, %v50_v21  ;;  %v58_v26 = vld [vmem:[#allocation2 + $0x3] sm:$0x1] }
   0xa   :  { %v56_v25 = vadd.f32 %v55_v18, %v54_v22 }
   0xb   :  { %v60_v27 = vadd.f32 %v59_v19, %v58_v26  ;;  %49 = vst.msk [vmem:[#allocation2] sm:$0x1] %vm48_vm2, %v47_v23  ;;  %53 = vst.msk [vmem:[#allocation2 + $0x1] sm:$0x1] %vm48_vm2, %v52_v24 }
   0xc   :  { %57 = vst.msk [vmem:[#allocation2 + $0x2] sm:$0x1] %vm48_vm2, %v56_v25 }
   0xd   :  { %61 = vst.msk [vmem:[#allocation2 + $0x3] sm:$0x1] %vm48_vm2, %v60_v27 }
  0x14   :  { %v65_v28 = vld [vmem:[#allocation2] sm:$0xf] }
  0x15   :  { %v67_v29 = vsel %vm24_vm0, %v65_v28, 0.0 }
  0x16   :  { %68 = vadd.xlane.f32.xlu0 %v67_v29 }
  0xa3   :  { %v69_v31 = vpop.xlane.xlu0 %68 }
  0xa4   :  { %v70_v32 = vmul.f32 0.04, %v69_v31 }
  0xa6   :  { %v71_v33 = vmul.f32 1000.0, %v70_v32  ;;  %v76_v34 = vmul.f32 500.0, %v70_v32  ;;  %v87_v35 = vsel %vm86_vm3, %v70_v32, 0.0  ;;  %v81_v38 = vmul.f32 2000.0, %v70_v32 }
  0xa7   :  { %v90_v36 = vrot.slane %v87_v35, 7 }
  0xa8   :  { %v73_v37 = vrot.slane %v71_v33, 1  ;;  %v78_v41 = vrot.slane %v76_v34, 3  ;;  %v83_v44 = vrot.slane %v81_v38, 2 }
  0xa9   :  { %v92_v39 = vsel %vm88_vm4, %v70_v32, %v90_v36 }
  0xaa   :  { %v75_v40 = vadd.f32 %v73_v37, %v70_v32  ;;  %v95_v42 = vrot.slane %v92_v39, 7 }
  0xac   :  { %v80_v43 = vadd.f32 %v78_v41, %v75_v40  ;;  %v97_v45 = vsel %vm93_vm5, %v70_v32, %v95_v42 }
  0xad   :  { %v100_v46 = vrot.slane %v97_v45, 7 }
  0xae   :  { %v85_v47 = vadd.f32 %v83_v44, %v80_v43 }
  0xaf   :  { %v102_v48 = vsel %vm98_vm6, %v70_v32, %v100_v46 }
  0xb0   :  { %106 = vperm.xlu0 %123, %v85_v47   ;;  %v110_v49 = vrot.slane %v102_v48, 3 }
 0x12f   :  { %v107_v50 = vpop.permute.xlu0 %106 }
 0x130   :  { %v112_v51 = vsel %vm103_vm7, %v107_v50, %v110_v49 }
 0x131   :  { %113 = vst [vmem:[%s189_s5] sm:$0x1] %v112_v51 }

</bundles_post_ra>
